<compile_context>
chip_gen: v5e
topology: v5e:2x2
jax: 0.10.0
libtpu: 0.0.40
codegen_flags: <defaults>
</compile_context>

<pallas_src>
import functools
import math

import jax
import jax.numpy as jnp
from jax.experimental import pallas as pl
from jax.experimental.pallas import tpu as pltpu


def _round_up(n, m):
    return ((n + m - 1) // m) * m


def _ffn_kernel(x_ref, w1_ref, b1_ref, w2_ref, b2_ref, g_ref, beta_ref, o_ref,
                acc_ref, *, eps, d_model_true, d_model_padded):
    k = pl.program_id(1)

    @pl.when(k == 0)
    def _():
        acc_ref[...] = jnp.zeros_like(acc_ref)

    # fc1 chunk: native-dtype operands on the MXU, f32 accumulation.
    h = jnp.dot(x_ref[...], w1_ref[...], preferred_element_type=jnp.float32)
    h = h + b1_ref[...]                                  # b1 chunk already f32
    # Exact (erf-based) GELU, matching F.gelu default; erf runs on the EUP.
    h = 0.5 * h * (1.0 + jax.lax.erf(h * (1.0 / math.sqrt(2.0))))

    # fc2 partial product over this d_ff chunk, accumulated in f32 VMEM scratch.
    acc_ref[...] += jnp.dot(h.astype(w2_ref.dtype), w2_ref[...],
                            preferred_element_type=jnp.float32)

    @pl.when(k == pl.num_programs(1) - 1)
    def _():
        x = x_ref[...].astype(jnp.float32)
        r = x + acc_ref[...] + b2_ref[...]               # residual (f32)

        inv_d = 1.0 / d_model_true
        if d_model_padded != d_model_true:
            # Padded feature columns of r are exactly zero (zero-padded x, W2
            # cols, b2), so the sum is already over the true features; only the
            # variance needs masking of the (r - mean) term in padded columns.
            col = jax.lax.broadcasted_iota(jnp.int32, r.shape, 1)
            mask = col < d_model_true
            mean = jnp.sum(r, axis=-1, keepdims=True) * inv_d
            centered = jnp.where(mask, r - mean, 0.0)
        else:
            mean = jnp.mean(r, axis=-1, keepdims=True)
            centered = r - mean

        var = jnp.sum(centered * centered, axis=-1, keepdims=True) * inv_d
        norm = centered * jax.lax.rsqrt(var + eps)
        # gamma/beta are zero in padded columns -> padded output columns are 0.
        o_ref[...] = (norm * g_ref[...] + beta_ref[...]).astype(o_ref.dtype)


def position_wise_feed_forward(x, w1, b1, w2, b2, gamma, beta,
                               *, eps=1e-5, row_tile=256, ff_tile=512):
    """x: (..., d_model). Weights stored as w1: (d_model, d_ff), w2: (d_ff, d_model)."""
    orig_shape = x.shape
    d_model = orig_shape[-1]
    d_ff = w1.shape[1]

    x2d = x.reshape(-1, d_model)
    rows = x2d.shape[0]

    # ---- tiling / padding (all static Python ints) -------------------------
    d_model_p = _round_up(d_model, 128)                  # lane-dense features

    tff = min(ff_tile, _round_up(d_ff, 128))             # d_ff chunk, mult of 128
    d_ff_p = _round_up(d_ff, tff)

    tm = min(row_tile, _round_up(rows, 8))               # row tile, mult of 8
    rows_p = _round_up(rows, tm)

    # ---- zero-pad operands (padding is mathematically inert, see kernel) ---
    x_p = jnp.zeros((rows_p, d_model_p), x.dtype).at[:rows, :d_model].set(x2d)
    w1_p = jnp.zeros((d_model_p, d_ff_p), w1.dtype).at[:d_model, :d_ff].set(w1)
    w2_p = jnp.zeros((d_ff_p, d_model_p), w2.dtype).at[:d_ff, :d_model].set(w2)
    b1_p = jnp.zeros((1, d_ff_p), jnp.float32).at[0, :d_ff].set(
        b1.astype(jnp.float32))
    b2_p = jnp.zeros((1, d_model_p), jnp.float32).at[0, :d_model].set(
        b2.astype(jnp.float32))
    g_p = jnp.zeros((1, d_model_p), jnp.float32).at[0, :d_model].set(
        gamma.astype(jnp.float32))
    beta_p = jnp.zeros((1, d_model_p), jnp.float32).at[0, :d_model].set(
        beta.astype(jnp.float32))

    grid = (rows_p // tm, d_ff_p // tff)

    out = pl.pallas_call(
        functools.partial(_ffn_kernel, eps=eps, d_model_true=d_model,
                          d_model_padded=d_model_p),
        out_shape=jax.ShapeDtypeStruct((rows_p, d_model_p), x.dtype),
        grid_spec=pltpu.PrefetchScalarGridSpec(
            num_scalar_prefetch=0,
            grid=grid,
            in_specs=[
                pl.BlockSpec((tm, d_model_p), lambda i, k: (i, 0)),    # x tile (k-invariant)
                pl.BlockSpec((d_model_p, tff), lambda i, k: (0, k)),   # W1 chunk
                pl.BlockSpec((1, tff), lambda i, k: (0, k)),           # b1 chunk (f32)
                pl.BlockSpec((tff, d_model_p), lambda i, k: (k, 0)),   # W2 chunk
                pl.BlockSpec((1, d_model_p), lambda i, k: (0, 0)),     # b2 (f32)
                pl.BlockSpec((1, d_model_p), lambda i, k: (0, 0)),     # gamma (f32)
                pl.BlockSpec((1, d_model_p), lambda i, k: (0, 0)),     # beta (f32)
            ],
            out_specs=pl.BlockSpec((tm, d_model_p), lambda i, k: (i, 0)),
            scratch_shapes=[pltpu.VMEM((tm, d_model_p), jnp.float32)],
        ),
        compiler_params=pltpu.CompilerParams(
            dimension_semantics=("parallel", "arbitrary"),
            vmem_limit_bytes=48 << 20),
    )(x_p, w1_p, b1_p, w2_p, b2_p, g_p, beta_p)

    return out[:rows, :d_model].reshape(orig_shape)


def _init_params(key, d_model, d_ff):
    """Deterministic init mimicking nn.Linear / nn.LayerNorm shapes."""
    k1, k2, k3, k4 = jax.random.split(key, 4)
    lim1 = 1.0 / math.sqrt(d_model)
    lim2 = 1.0 / math.sqrt(d_ff)
    # weights stored as (in, out) so the kernel does x @ W (PyTorch stores (out,in))
    w1 = jax.random.uniform(k1, (d_model, d_ff), jnp.float32, -lim1, lim1)
    b1 = jax.random.uniform(k2, (d_ff,), jnp.float32, -lim1, lim1)
    w2 = jax.random.uniform(k3, (d_ff, d_model), jnp.float32, -lim2, lim2)
    b2 = jax.random.uniform(k4, (d_model,), jnp.float32, -lim2, lim2)
    gamma = jnp.ones((d_model,), jnp.float32)
    beta = jnp.zeros((d_model,), jnp.float32)
    return w1, b1, w2, b2, gamma, beta


def _reference(x, w1, b1, w2, b2, gamma, beta, eps=1e-5):
    h = jax.nn.gelu(x @ w1 + b1, approximate=False)
    y = h @ w2 + b2
    r = x + y
    mean = jnp.mean(r, axis=-1, keepdims=True)
    var = jnp.mean((r - mean) ** 2, axis=-1, keepdims=True)
    return (r - mean) / jnp.sqrt(var + eps) * gamma + beta


if __name__ == "__main__":
    batch, seq, d_model, d_ff = 2, 8, 32, 64
    key = jax.random.PRNGKey(0)
    kx, kx2, kp = jax.random.split(key, 3)

    params = _init_params(kp, d_model, d_ff)

    # Regular case.
    x = jax.random.normal(kx, (batch, seq, d_model), jnp.float32)
    out = jax.block_until_ready(position_wise_feed_forward(x, *params))
    ref = _reference(x, *params)
    assert out.shape == x.shape
    assert jnp.allclose(out, ref, atol=1e-4, rtol=1e-4), (
        float(jnp.max(jnp.abs(out - ref))))

    # Ragged row count (exercises row padding instead of the old assert).
    x2 = jax.random.normal(kx2, (3, 5, d_model), jnp.float32)
    out2 = jax.block_until_ready(position_wise_feed_forward(x2, *params))
    ref2 = _reference(x2, *params)
    assert out2.shape == x2.shape
    assert jnp.allclose(out2, ref2, atol=1e-4, rtol=1e-4), (
        float(jnp.max(jnp.abs(out2 - ref2))))

    print("KERNEL_OK")
</pallas_src>

<mosaic_0001>
module attributes {stable_mosaic.version = 11 : i64} {
  func.func @_ffn_kernel(%arg0: i32, %arg1: i32, %arg2: memref<16x128xf32, #tpu.memory_space<vmem>>, %arg3: memref<128x128xf32, #tpu.memory_space<vmem>>, %arg4: memref<1x128xf32, #tpu.memory_space<vmem>>, %arg5: memref<128x128xf32, #tpu.memory_space<vmem>>, %arg6: memref<1x128xf32, #tpu.memory_space<vmem>>, %arg7: memref<1x128xf32, #tpu.memory_space<vmem>>, %arg8: memref<1x128xf32, #tpu.memory_space<vmem>>, %arg9: memref<16x128xf32, #tpu.memory_space<vmem>>, %arg10: memref<16x128xf32, #tpu.memory_space<vmem>>) attributes {dimension_semantics = [#tpu.dimension_semantics<parallel>, #tpu.dimension_semantics<arbitrary>], iteration_bounds = array<i64: 1, 1>, scalar_prefetch = 0 : i64, scratch_operands = 1 : i64, tpu.core_type = #tpu.core_type<tc>, window_params = [{transform_indices = @transform_0, window_bounds = array<i64: 16, 128>}, {transform_indices = @transform_1, window_bounds = array<i64: 128, 128>}, {transform_indices = @transform_2, window_bounds = array<i64: 1, 128>}, {transform_indices = @transform_3, window_bounds = array<i64: 128, 128>}, {pipeline_mode = #tpu.pipeline_mode<synchronous>, transform_indices = @transform_4, window_bounds = array<i64: 1, 128>}, {pipeline_mode = #tpu.pipeline_mode<synchronous>, transform_indices = @transform_5, window_bounds = array<i64: 1, 128>}, {pipeline_mode = #tpu.pipeline_mode<synchronous>, transform_indices = @transform_6, window_bounds = array<i64: 1, 128>}, {transform_indices = @transform_7, window_bounds = array<i64: 16, 128>}]} {
    %c0_i32 = arith.constant 0 : i32
    %0 = arith.cmpi eq, %arg1, %c0_i32 : i32
    %1 = arith.extui %0 : i1 to i32
    %c0_i32_0 = arith.constant 0 : i32
    %2 = arith.cmpi ne, %1, %c0_i32_0 : i32
    scf.if %2 {
      %cst_18 = arith.constant 0.000000e+00 : f32
      %25 = vector.broadcast %cst_18 : f32 to vector<16x128xf32>
      %c0_19 = arith.constant 0 : index
      %c0_20 = arith.constant 0 : index
      %26 = vector.load %arg10[%c0_19, %c0_20] : memref<16x128xf32, #tpu.memory_space<vmem>>, vector<16x128xf32>
      tpu.vector_store %arg10[%c0_19, %c0_20], %25 {strides = array<i32>} : memref<16x128xf32, #tpu.memory_space<vmem>>, vector<16x128xf32>,
    } else {
    }
    %c0 = arith.constant 0 : index
    %c0_1 = arith.constant 0 : index
    %3 = vector.load %arg2[%c0, %c0_1] : memref<16x128xf32, #tpu.memory_space<vmem>>, vector<16x128xf32>
    %c0_2 = arith.constant 0 : index
    %c0_3 = arith.constant 0 : index
    %4 = vector.load %arg3[%c0_2, %c0_3] : memref<128x128xf32, #tpu.memory_space<vmem>>, vector<128x128xf32>
    %cst = arith.constant dense<0.000000e+00> : vector<16x128xf32>
    %5 = tpu.matmul %3, %4, %cst {dimension_numbers = #tpu.dot_dimension_numbers<[1], [0], [0], [1], [0, 0, 1, 1], [], []>} : vector<16x128xf32>, vector<128x128xf32>, vector<16x128xf32> -> vector<16x128xf32>
    %c0_4 = arith.constant 0 : index
    %c0_5 = arith.constant 0 : index
    %6 = vector.load %arg4[%c0_4, %c0_5] : memref<1x128xf32, #tpu.memory_space<vmem>>, vector<1x128xf32>
    %7 = vector.broadcast %6 : vector<1x128xf32> to vector<16x128xf32>
    %8 = arith.addf %5, %7 : vector<16x128xf32>
    %cst_6 = arith.constant 5.000000e-01 : f32
    %9 = vector.broadcast %cst_6 : f32 to vector<16x128xf32>
    %10 = arith.mulf %9, %8 : vector<16x128xf32>
    %cst_7 = arith.constant 0.707106769 : f32
    %11 = vector.broadcast %cst_7 : f32 to vector<16x128xf32>
    %12 = arith.mulf %8, %11 : vector<16x128xf32>
    %13 = math.erf %12 : vector<16x128xf32>
    %cst_8 = arith.constant 1.000000e+00 : f32
    %14 = vector.broadcast %cst_8 : f32 to vector<16x128xf32>
    %15 = arith.addf %14, %13 : vector<16x128xf32>
    %16 = arith.mulf %10, %15 : vector<16x128xf32>
    %c0_9 = arith.constant 0 : index
    %c0_10 = arith.constant 0 : index
    %17 = vector.load %arg10[%c0_9, %c0_10] : memref<16x128xf32, #tpu.memory_space<vmem>>, vector<16x128xf32>
    %c0_11 = arith.constant 0 : index
    %c0_12 = arith.constant 0 : index
    %18 = vector.load %arg5[%c0_11, %c0_12] : memref<128x128xf32, #tpu.memory_space<vmem>>, vector<128x128xf32>
    %cst_13 = arith.constant dense<0.000000e+00> : vector<16x128xf32>
    %19 = tpu.matmul %16, %18, %cst_13 {dimension_numbers = #tpu.dot_dimension_numbers<[1], [0], [0], [1], [0, 0, 1, 1], [], []>} : vector<16x128xf32>, vector<128x128xf32>, vector<16x128xf32> -> vector<16x128xf32>
    %20 = arith.addf %17, %19 : vector<16x128xf32>
    %c0_14 = arith.constant 0 : index
    %c0_15 = arith.constant 0 : index
    %21 = vector.load %arg10[%c0_14, %c0_15] : memref<16x128xf32, #tpu.memory_space<vmem>>, vector<16x128xf32>
    tpu.vector_store %arg10[%c0_14, %c0_15], %20 {strides = array<i32>} : memref<16x128xf32, #tpu.memory_space<vmem>>, vector<16x128xf32>,
    %c0_i32_16 = arith.constant 0 : i32
    %22 = arith.cmpi eq, %arg1, %c0_i32_16 : i32
    %23 = arith.extui %22 : i1 to i32
    %c0_i32_17 = arith.constant 0 : i32
    %24 = arith.cmpi ne, %23, %c0_i32_17 : i32
    scf.if %24 {
      %c0_18 = arith.constant 0 : index
      %c0_19 = arith.constant 0 : index
      %25 = vector.load %arg2[%c0_18, %c0_19] : memref<16x128xf32, #tpu.memory_space<vmem>>, vector<16x128xf32>
      %c0_20 = arith.constant 0 : index
      %c0_21 = arith.constant 0 : index
      %26 = vector.load %arg10[%c0_20, %c0_21] : memref<16x128xf32, #tpu.memory_space<vmem>>, vector<16x128xf32>
      %27 = arith.addf %25, %26 : vector<16x128xf32>
      %c0_22 = arith.constant 0 : index
      %c0_23 = arith.constant 0 : index
      %28 = vector.load %arg6[%c0_22, %c0_23] : memref<1x128xf32, #tpu.memory_space<vmem>>, vector<1x128xf32>
      %29 = vector.broadcast %28 : vector<1x128xf32> to vector<16x128xf32>
      %30 = arith.addf %27, %29 : vector<16x128xf32>
      %31 = tpu.iota {dimensions = array<i32: 1>} : vector<16x128xi32>
      %c32_i32 = arith.constant 32 : i32
      %32 = vector.broadcast %c32_i32 : i32 to vector<16x128xi32>
      %33 = arith.cmpi slt, %31, %32 : vector<16x128xi32>
      %cst_24 = arith.constant dense<0.000000e+00> : vector<16xf32>
      %34 = vector.multi_reduction <add>, %30, %cst_24 [1] : vector<16x128xf32> to vector<16xf32>
      %35 = vector.shape_cast %34 : vector<16xf32> to vector<16x1xf32>
      %cst_25 = arith.constant 3.125000e-02 : f32
      %36 = vector.broadcast %cst_25 : f32 to vector<16x1xf32>
      %37 = arith.mulf %35, %36 : vector<16x1xf32>
      %38 = vector.broadcast %37 : vector<16x1xf32> to vector<16x128xf32>
      %39 = arith.subf %30, %38 : vector<16x128xf32>
      %cst_26 = arith.constant 0.000000e+00 : f32
      %40 = vector.broadcast %cst_26 : f32 to vector<16x128xf32>
      %41 = arith.select %33, %39, %40 : vector<16x128xi1>, vector<16x128xf32>
      %42 = arith.mulf %41, %41 : vector<16x128xf32>
      %cst_27 = arith.constant dense<0.000000e+00> : vector<16xf32>
      %43 = vector.multi_reduction <add>, %42, %cst_27 [1] : vector<16x128xf32> to vector<16xf32>
      %44 = vector.shape_cast %43 : vector<16xf32> to vector<16x1xf32>
      %cst_28 = arith.constant 3.125000e-02 : f32
      %45 = vector.broadcast %cst_28 : f32 to vector<16x1xf32>
      %46 = arith.mulf %44, %45 : vector<16x1xf32>
      %cst_29 = arith.constant 9.99999974E-6 : f32
      %47 = vector.broadcast %cst_29 : f32 to vector<16x1xf32>
      %48 = arith.addf %46, %47 : vector<16x1xf32>
      %49 = math.rsqrt %48 : vector<16x1xf32>
      %50 = vector.broadcast %49 : vector<16x1xf32> to vector<16x128xf32>
      %51 = arith.mulf %41, %50 : vector<16x128xf32>
      %c0_30 = arith.constant 0 : index
      %c0_31 = arith.constant 0 : index
      %52 = vector.load %arg7[%c0_30, %c0_31] : memref<1x128xf32, #tpu.memory_space<vmem>>, vector<1x128xf32>
      %53 = vector.broadcast %52 : vector<1x128xf32> to vector<16x128xf32>
      %54 = arith.mulf %51, %53 : vector<16x128xf32>
      %c0_32 = arith.constant 0 : index
      %c0_33 = arith.constant 0 : index
      %55 = vector.load %arg8[%c0_32, %c0_33] : memref<1x128xf32, #tpu.memory_space<vmem>>, vector<1x128xf32>
      %56 = vector.broadcast %55 : vector<1x128xf32> to vector<16x128xf32>
      %57 = arith.addf %54, %56 : vector<16x128xf32>
      %c0_34 = arith.constant 0 : index
      %c0_35 = arith.constant 0 : index
      %58 = vector.load %arg9[%c0_34, %c0_35] : memref<16x128xf32, #tpu.memory_space<vmem>>, vector<16x128xf32>
      tpu.vector_store %arg9[%c0_34, %c0_35], %57 {strides = array<i32>} : memref<16x128xf32, #tpu.memory_space<vmem>>, vector<16x128xf32>,
    } else {
    }
    return
  }
  func.func @transform_0(%arg0: i32, %arg1: i32) -> (i32, i32) {
    %c0_i32 = arith.constant 0 : i32
    %c0_i32_0 = arith.constant 0 : i32
    return %arg0, %c0_i32 : i32, i32
  }
  func.func @transform_1(%arg0: i32, %arg1: i32) -> (i32, i32) {
    %c0_i32 = arith.constant 0 : i32
    %c0_i32_0 = arith.constant 0 : i32
    return %c0_i32, %arg1 : i32, i32
  }
  func.func @transform_2(%arg0: i32, %arg1: i32) -> (i32, i32) {
    %c0_i32 = arith.constant 0 : i32
    %c0_i32_0 = arith.constant 0 : i32
    return %c0_i32, %arg1 : i32, i32
  }
  func.func @transform_3(%arg0: i32, %arg1: i32) -> (i32, i32) {
    %c0_i32 = arith.constant 0 : i32
    %c0_i32_0 = arith.constant 0 : i32
    return %arg1, %c0_i32 : i32, i32
  }
  func.func @transform_4(%arg0: i32, %arg1: i32) -> (i32, i32) {
    %c0_i32 = arith.constant 0 : i32
    %c0_i32_0 = arith.constant 0 : i32
    %c0_i32_1 = arith.constant 0 : i32
    return %c0_i32, %c0_i32_0 : i32, i32
  }
  func.func @transform_5(%arg0: i32, %arg1: i32) -> (i32, i32) {
    %c0_i32 = arith.constant 0 : i32
    %c0_i32_0 = arith.constant 0 : i32
    %c0_i32_1 = arith.constant 0 : i32
    return %c0_i32, %c0_i32_0 : i32, i32
  }
  func.func @transform_6(%arg0: i32, %arg1: i32) -> (i32, i32) {
    %c0_i32 = arith.constant 0 : i32
    %c0_i32_0 = arith.constant 0 : i32
    %c0_i32_1 = arith.constant 0 : i32
    return %c0_i32, %c0_i32_0 : i32, i32
  }
  func.func @transform_7(%arg0: i32, %arg1: i32) -> (i32, i32) {
    %c0_i32 = arith.constant 0 : i32
    %c0_i32_0 = arith.constant 0 : i32
    return %arg0, %c0_i32 : i32, i32
  }
}

</mosaic_0001>

<bundles_post_ra>
// kernel: tpu_custom_call.1
= control target key start
LH: loop header
LB: loop body
LE: loop exit
PB: predicated region body
PF: predicated region fallthrough
CT: control target
= control target key end

     0   :  { %12 = vsyncpa [#allocation4], 0  ;;  %s626_s0 = inlined_call_operand.hbm [shape: f32[16,128], index: 0, kind: input, shape index: {}]   ;;  %s627_s1 = inlined_call_operand.hbm [shape: f32[128,128], index: 1, kind: input, shape index: {}]   ;;  %s628_s2 = inlined_call_operand.vmem [shape: f32[1,128], index: 2, kind: input, shape index: {}]   ;;  %s629_s3 = inlined_call_operand.hbm [shape: f32[128,128], index: 3, kind: input, shape index: {}]   ;;  %s630_s4 = inlined_call_operand.vmem [shape: f32[1,128], index: 4, kind: input, shape index: {}]   ;;  %s631_s5 = inlined_call_operand.vmem [shape: f32[1,128], index: 5, kind: input, shape index: {}]   ;;  %s632_s6 = inlined_call_operand.vmem [shape: f32[1,128], index: 6, kind: input, shape index: {}]   ;;  %s633_s7 = inlined_call_operand.hbm [shape: f32[16,128], index: 7, kind: output, shape index: {}]  }
   0x1   :  { %13 = vsyncpa [#allocation7], 0 }
   0x2   :  { %14 = vsyncpa [#allocation5], 0  ;;  %s32_s26 = sshll.u32 %s627_s1, 4  ;;  %s506_s27 = smov [#allocation6]   ;;  %s33_s26 = int_to_ptr.hbm [resolvable:$true] %s32_s26 }
   0x3   :  { %s34_s28 = sshll.u32 %s506_s27, 4  ;;  %s19_s8 = sshll.u32 %s626_s0, 4  ;;  %s35_s28 = int_to_ptr.vmem [resolvable:$true] %s34_s28  ;;  %s20_s8 = int_to_ptr.hbm [resolvable:$true] %s19_s8 }
   0x4   :  { %s507_s9 = smov 128   ;;  %s508_s10 = smov 8  }
   0x5   :  { %40 = dma.hbm_to_vmem [thread:$0]  %s33_s26, 2048, %s35_s28, [#allocation7], %s507_s9, %s507_s9, %s508_s10  }
   0x6   :  { %s509_s11 = smov [#allocation3]   ;;  %s47_s1 = sshll.u32 %s629_s3, 4  ;;  %s48_s1 = int_to_ptr.hbm [resolvable:$true] %s47_s1 }
   0x7   :  { %s21_s12 = sshll.u32 %s509_s11, 4  ;;  %s510_s0 = smov [#allocation8]   ;;  %s22_s12 = int_to_ptr.vmem [resolvable:$true] %s21_s12 }
   0x8   :  { %27 = dma.hbm_to_vmem [thread:$0]  %s20_s8, 256, %s22_s12, [#allocation4], %s507_s9, %s507_s9, %s508_s10  }
   0x9   :  { %s49_s15 = sshll.u32 %s510_s0, 4  ;;  %s50_s15 = int_to_ptr.vmem [resolvable:$true] %s49_s15 }
   0xa   :  { %55 = dma.hbm_to_vmem [thread:$0]  %s48_s1, 2048, %s50_s15, [#allocation7], %s507_s9, %s507_s9, %s508_s10  }
   0xb   :  { %500 = dma.done.wait [#allocation4], 256  }
   0xc   :  { %501 = vsyncadd [#allocation4], 4294967040 }
   0xd   :  { %502 = dma.done.wait [#allocation7], 4096  }
   0xe   :  { %503 = vsyncadd [#allocation7], 4294963200  ;;  %v97_v0 = vld [vmem:[#allocation6 + $0x78] sm:$0xff]  ;;  %v96_v1 = vld [vmem:[#allocation6 + $0x70] sm:$0xff]  ;;  %s338_s24 = sshll.u32 %s633_s7, 4  ;;  %s339_s24 = int_to_ptr.hbm [resolvable:$true] %s338_s24 }
   0xf   :  { %102 = vmatpush.msra.mxu0 %v97_v0  ;;  %354 = vmatpush.msra.mxu2 %v97_v0  ;;  %v95_v2 = vld [vmem:[#allocation6 + $0x68] sm:$0xff]  ;;  %v94_v3 = vld [vmem:[#allocation6 + $0x60] sm:$0xff]  ;;  %v93_v4 = vld [vmem:[#allocation6 + $0x58] sm:$0xff] }
  0x10   :  { %v92_v5 = vld [vmem:[#allocation6 + $0x50] sm:$0xff]  ;;  %v91_v6 = vld [vmem:[#allocation6 + $0x48] sm:$0xff]  ;;  %v90_v7 = vld [vmem:[#allocation6 + $0x40] sm:$0xff] }
  0x11   :  { %103 = vmatpush.msra.mxu0 %v96_v1  ;;  %355 = vmatpush.msra.mxu2 %v96_v1  ;;  %v89_v8 = vld [vmem:[#allocation6 + $0x38] sm:$0xff]  ;;  %v88_v9 = vld [vmem:[#allocation6 + $0x30] sm:$0xff]  ;;  %v87_v10 = vld [vmem:[#allocation6 + $0x28] sm:$0xff] }
  0x12   :  { %v86_v11 = vld [vmem:[#allocation6 + $0x20] sm:$0xff]  ;;  %v85_v12 = vld [vmem:[#allocation6 + $0x18] sm:$0xff]  ;;  %v84_v13 = vld [vmem:[#allocation6 + $0x10] sm:$0xff] }
  0x13   :  { %104 = vmatpush.msra.mxu0 %v95_v2  ;;  %356 = vmatpush.msra.mxu2 %v95_v2  ;;  %v83_v14 = vld [vmem:[#allocation6 + $0x8] sm:$0xff]  ;;  %v82_v15 = vld [vmem:[#allocation6] sm:$0xff]  ;;  %v570_v16 = vld [vmem:[#allocation3] sm:$0xff] }
  0x14   :  { %v572_v17 = vld [vmem:[#allocation3 + $0x8] sm:$0xff]  ;;  %v229_v19 = vld [vmem:[#allocation8 + $0x70] sm:$0xff]  ;;  %v228_v20 = vld [vmem:[#allocation8 + $0x68] sm:$0xff] }
  0x15   :  { %105 = vmatpush.msra.mxu0 %v94_v3  ;;  %357 = vmatpush.msra.mxu2 %v94_v3  ;;  %v230_v18 = vld [vmem:[#allocation8 + $0x78] sm:$0xff]  ;;  %v227_v21 = vld [vmem:[#allocation8 + $0x60] sm:$0xff]  ;;  %v392_v22 = vld [vmem:[%s628_s2] ss:$0 sm:$0xff] }
  0x16   :  { %231 = vmatpush.msra.mxu1 %v230_v18  ;;  %370 = vmatpush.msra.mxu3 %v230_v18  ;;  %v226_v23 = vld [vmem:[#allocation8 + $0x58] sm:$0xff]  ;;  %v225_v25 = vld [vmem:[#allocation8 + $0x50] sm:$0xff]  ;;  %v224_v27 = vld [vmem:[#allocation8 + $0x48] sm:$0xff] }
  0x17   :  { %106 = vmatpush.msra.mxu0 %v93_v4  ;;  %358 = vmatpush.msra.mxu2 %v93_v4  ;;  %v223_v29 = vld [vmem:[#allocation8 + $0x40] sm:$0xff]  ;;  %v222_v30 = vld [vmem:[#allocation8 + $0x38] sm:$0xff]  ;;  %v221_v33 = vld [vmem:[#allocation8 + $0x30] sm:$0xff] }
  0x18   :  { %232 = vmatpush.msra.mxu1 %v229_v19  ;;  %371 = vmatpush.msra.mxu3 %v229_v19  ;;  %v220_v36 = vld [vmem:[#allocation8 + $0x28] sm:$0xff]  ;;  %v219_v39 = vld [vmem:[#allocation8 + $0x20] sm:$0xff]  ;;  %v218_v43 = vld [vmem:[#allocation8 + $0x18] sm:$0xff] }
  0x19   :  { %107 = vmatpush.msra.mxu0 %v92_v5  ;;  %359 = vmatpush.msra.mxu2 %v92_v5  ;;  %v217_v47 = vld [vmem:[#allocation8 + $0x10] sm:$0xff]  ;;  %v216_v52 = vld [vmem:[#allocation8 + $0x8] sm:$0xff]  ;;  %v215_v56 = vld [vmem:[#allocation8] sm:$0xff] }
  0x1a   :  { %233 = vmatpush.msra.mxu1 %v228_v20  ;;  %372 = vmatpush.msra.mxu3 %v228_v20 }
  0x1b   :  { %108 = vmatpush.msra.mxu0 %v91_v6  ;;  %360 = vmatpush.msra.mxu2 %v91_v6 }
  0x1c   :  { %234 = vmatpush.msra.mxu1 %v227_v21  ;;  %373 = vmatpush.msra.mxu3 %v227_v21 }
  0x1d   :  { %109 = vmatpush.msra.mxu0 %v90_v7  ;;  %361 = vmatpush.msra.mxu2 %v90_v7 }
  0x1e   :  { %235 = vmatpush.msra.mxu1 %v226_v23  ;;  %374 = vmatpush.msra.mxu3 %v226_v23 }
  0x1f   :  { %110 = vmatpush.msra.mxu0 %v89_v8  ;;  %362 = vmatpush.msra.mxu2 %v89_v8 }
  0x20   :  { %236 = vmatpush.msra.mxu1 %v225_v25  ;;  %375 = vmatpush.msra.mxu3 %v225_v25 }
  0x21   :  { %111 = vmatpush.msra.mxu0 %v88_v9  ;;  %363 = vmatpush.msra.mxu2 %v88_v9 }
  0x22   :  { %237 = vmatpush.msra.mxu1 %v224_v27  ;;  %376 = vmatpush.msra.mxu3 %v224_v27 }
  0x23   :  { %112 = vmatpush.msra.mxu0 %v87_v10  ;;  %364 = vmatpush.msra.mxu2 %v87_v10 }
  0x24   :  { %238 = vmatpush.msra.mxu1 %v223_v29  ;;  %377 = vmatpush.msra.mxu3 %v223_v29 }
  0x25   :  { %113 = vmatpush.msra.mxu0 %v86_v11  ;;  %365 = vmatpush.msra.mxu2 %v86_v11 }
  0x26   :  { %239 = vmatpush.msra.mxu1 %v222_v30  ;;  %378 = vmatpush.msra.mxu3 %v222_v30 }
  0x27   :  { %114 = vmatpush.msra.mxu0 %v85_v12  ;;  %366 = vmatpush.msra.mxu2 %v85_v12 }
  0x28   :  { %240 = vmatpush.msra.mxu1 %v221_v33  ;;  %379 = vmatpush.msra.mxu3 %v221_v33 }
  0x29   :  { %115 = vmatpush.msra.mxu0 %v84_v13  ;;  %367 = vmatpush.msra.mxu2 %v84_v13 }
  0x2a   :  { %241 = vmatpush.msra.mxu1 %v220_v36  ;;  %380 = vmatpush.msra.mxu3 %v220_v36 }
  0x2b   :  { %116 = vmatpush.msra.mxu0 %v83_v14  ;;  %368 = vmatpush.msra.mxu2 %v83_v14 }
  0x2c   :  { %242 = vmatpush.msra.mxu1 %v219_v39  ;;  %381 = vmatpush.msra.mxu3 %v219_v39 }
  0x2d   :  { %117 = vmatpush.msra.mxu0 %v82_v15  ;;  %369 = vmatpush.msra.mxu2 %v82_v15 }
  0x2e   :  { %118 = vmatmul.f32.vlgmr.msra.gmra.mxu0 %v570_v16  ;;  %121 = vmatmul.f32.vlgmr.msra.gmra.mxu2 %v572_v17 }
  0x2f   :  { %243 = vmatpush.msra.mxu1 %v218_v43  ;;  %382 = vmatpush.msra.mxu3 %v218_v43 }
  0x31   :  { %244 = vmatpush.msra.mxu1 %v217_v47  ;;  %383 = vmatpush.msra.mxu3 %v217_v47 }
  0x33   :  { %245 = vmatpush.msra.mxu1 %v216_v52  ;;  %384 = vmatpush.msra.mxu3 %v216_v52 }
  0x35   :  { %246 = vmatpush.msra.mxu1 %v215_v56  ;;  %385 = vmatpush.msra.mxu3 %v215_v56 }
  0xab   :  { %v119_v24 = vpop.f32.mrf.mxu0 }
  0xac   :  { %v579_v26 = vadd.f32 %v392_v22, %v119_v24 }
  0xae   :  { %v582_v28 = vmul.f32 0.70710677, %v579_v26 }
  0xb0   :  { %v129_v31 = vmul.f32 %v582_v28, %v582_v28 }
  0xb1   :  { %v122_v32 = vpop.f32.mrf.mxu2 }
  0xb2   :  { %v586_v34 = vmin.f32 %v129_v31, 16.0  ;;  %v588_v35 = vadd.f32 %v392_v22, %v122_v32 }
  0xb4   :  { %v131_v37 = vmul.f32 2.1237322e-06, %v586_v34  ;;  %v592_v38 = vmul.f32 0.70710677, %v588_v35  ;;  %v142_v40 = vmul.f32 3.8918573e-05, %v586_v34 }
  0xb6   :  { %v132_v41 = vadd.f32 0.00028619796, %v131_v37  ;;  %v169_v42 = vmul.f32 %v592_v38, %v592_v38  ;;  %v143_v44 = vadd.f32 0.001143296, %v142_v40 }
  0xb8   :  { %v133_v45 = vmul.f32 %v132_v41, %v586_v34  ;;  %v170_v46 = vmin.f32 %v169_v42, 16.0  ;;  %v144_v48 = vmul.f32 %v143_v44, %v586_v34 }
  0xba   :  { %v171_v49 = vmul.f32 2.1237322e-06, %v170_v46  ;;  %v182_v50 = vmul.f32 3.8918573e-05, %v170_v46  ;;  %v134_v51 = vadd.f32 0.0036580483, %v133_v45 }
  0xbb   :  { %v145_v53 = vadd.f32 0.014752088, %v144_v48 }
  0xbc   :  { %v172_v54 = vadd.f32 0.00028619796, %v171_v49  ;;  %v183_v55 = vadd.f32 0.001143296, %v182_v50  ;;  %v135_v60 = vmul.f32 %v134_v51, %v586_v34  ;;  %v125_v49 = vmul.f32 0.5, %v579_v26 }
  0xbd   :  { %v146_v57 = vmul.f32 %v145_v53, %v586_v34 }
  0xbe   :  { %v173_v58 = vmul.f32 %v172_v54, %v170_v46  ;;  %v184_v59 = vmul.f32 %v183_v55, %v170_v46  ;;  %v136_v2 = vadd.f32 0.05243302, %v135_v60  ;;  %v126_v55 = vmul.f32 0.5, %v588_v35 }
  0xbf   :  { %v147_v61 = vadd.f32 0.112945676, %v146_v57 }
  0xc0   :  { %v174_v62 = vadd.f32 0.0036580483, %v173_v58  ;;  %v185_v63 = vadd.f32 0.014752088, %v184_v59  ;;  %v137_v8 = vmul.f32 %v136_v2, %v586_v34  ;;  %v393_v58 = vld [vmem:[%s630_s4] ss:$0 sm:$0xff] }
  0xc1   :  { %v148_v0 = vmul.f32 %v147_v61, %v586_v34 }
  0xc2   :  { %v186_v1 = vmul.f32 %v185_v63, %v170_v46  ;;  %v175_v4 = vmul.f32 %v174_v62, %v170_v46  ;;  %v138_v13 = vadd.f32 0.18741608, %v137_v8  ;;  %v273_v63 = vlaneseq }
  0xc3   :  { %v149_v3 = vadd.f32 0.4994258, %v148_v0 }
  0xc4   :  { %v187_v5 = vadd.f32 0.112945676, %v186_v1  ;;  %v176_v10 = vadd.f32 0.05243302, %v175_v4  ;;  %v139_v19 = vmul.f32 %v138_v13, %v586_v34  ;;  %v274_v0 = vand.u32 127, %v273_v63 }
  0xc5   :  { %v150_v6 = vmul.f32 %v149_v3, %v586_v34 }
  0xc6   :  { %v188_v7 = vmul.f32 %v187_v5, %v170_v46  ;;  %v177_v14 = vmul.f32 %v176_v10, %v170_v46  ;;  %v140_v23 = vadd.f32 1.1283791, %v139_v19  ;;  %vm275_vm8 = vcmp.lt.s32.totalorder %v274_v0, 32 }
  0xc7   :  { %v151_v9 = vadd.f32 1.0, %v150_v6 }
  0xc8   :  { %v189_v11 = vadd.f32 0.4994258, %v188_v7  ;;  %v178_v20 = vadd.f32 0.18741608, %v177_v14  ;;  %v141_v33 = vmul.f32 %v140_v23, %v582_v28 }
  0xc9   :  { %396 = vrcp.f32 %v151_v9  ;;  %v163_v24 = vand.u32 2147483648, %v151_v9  ;;  %v161_v30 = vand.u32 2147483647, %v151_v9  ;;  %vm157_vm1 = vweird.f32 %v151_v9 }
  0xca   :  { %v190_v12 = vmul.f32 %v189_v11, %v170_v46  ;;  %v179_v27 = vmul.f32 %v178_v20, %v170_v46 }
  0xcb   :  { %v164_v36 = vor.u32 1.1754944e-38, %v163_v24  ;;  %vm162_vm3 = vcmp.eq.f32.partialorder %v161_v30, 8.507059e+37 }
  0xcc   :  { %v191_v15 = vadd.f32 1.0, %v190_v12  ;;  %v180_v39 = vadd.f32 1.1283791, %v179_v27 }
  0xce   :  { %398 = vrcp.f32 %v191_v15  ;;  %v203_v40 = vand.u32 2147483648, %v191_v15  ;;  %v201_v43 = vand.u32 2147483647, %v191_v15  ;;  %vm197_vm5 = vweird.f32 %v191_v15 }
  0xcf   :  { %v397_v18 = vpop.eup %396  ;;  %v181_v48 = vmul.f32 %v180_v39, %v592_v38 }
  0xd0   :  { %v153_v21 = vmul.f32 %v397_v18, %v151_v9  ;;  %vm158_vm0 = vweird.f32 %v397_v18  ;;  %v204_v47 = vor.u32 1.1754944e-38, %v203_v40  ;;  %vm202_vm7 = vcmp.eq.f32.partialorder %v201_v43, 8.507059e+37 }
  0xd1   :  { %vm159_vm2 = vmor %vm157_vm1, %vm158_vm0 }
  0xd2   :  { %v154_v22 = vsub.f32 1.0, %v153_v21 }
  0xd4   :  { %v399_v25 = vpop.eup %398  ;;  %v155_v29 = vmul.f32 %v397_v18, %v154_v22  ;;  %v394_v22 = vld [vmem:[%s631_s5] ss:$0 sm:$0xff]  ;;  %s511_s5 = smov [#allocation9]  }
  0xd5   :  { %v193_v31 = vmul.f32 %v399_v25, %v191_v15  ;;  %vm198_vm4 = vweird.f32 %v399_v25  ;;  %s336_s21 = sshll.u32 %s511_s5, 4  ;;  %s337_s21 = int_to_ptr.vmem [resolvable:$true] %s336_s21 }
  0xd6   :  { %v156_v32 = vadd.f32 %v397_v18, %v155_v29  ;;  %vm199_vm6 = vmor %vm197_vm5, %vm198_vm4  ;;  %v395_v29 = vld [vmem:[%s632_s6] ss:$0 sm:$0xff] }
  0xd7   :  { %v194_v37 = vsub.f32 1.0, %v193_v31 }
  0xd8   :  { %v160_v34 = vsel %vm159_vm2, %v397_v18, %v156_v32 }
  0xd9   :  { %v165_v41 = vsel %vm162_vm3, %v164_v36, %v160_v34  ;;  %v195_v42 = vmul.f32 %v399_v25, %v194_v37 }
  0xda   :  { %v166_v44 = vmul.f32 %v165_v41, %v141_v33 }
  0xdb   :  { %v196_v45 = vadd.f32 %v399_v25, %v195_v42 }
  0xdc   :  { %v352_v46 = vclamps-f32 %v166_v44, 1.0 }
  0xdd   :  { %v200_v28 = vsel %vm199_vm6, %v399_v25, %v196_v45 }
  0xde   :  { %v209_v50 = vadd.f32 1.0, %v352_v46  ;;  %v205_v51 = vsel %vm202_vm7, %v204_v47, %v200_v28 }
  0xdf   :  { %v206_v52 = vmul.f32 %v205_v51, %v181_v48 }
  0xe0   :  { %v211_v53 = vmul.f32 %v209_v50, %v125_v49 }
  0xe1   :  { %v353_v54 = vclamps-f32 %v206_v52, 1.0 }
  0xe2   :  { %247 = vmatmul.f32.vlgmr.msra.gmra.mxu1 %v211_v53 }
  0xe3   :  { %v210_v56 = vadd.f32 1.0, %v353_v54 }
  0xe5   :  { %v212_v57 = vmul.f32 %v210_v56, %v126_v55 }
  0xe7   :  { %250 = vmatmul.f32.vlgmr.msra.gmra.mxu3 %v212_v57 }
 0x15f   :  { %v248_v38 = vpop.f32.mrf.mxu1 }
 0x160   :  { %v265_v59 = vadd.f32 %v248_v38, %v570_v16 }
 0x162   :  { %v271_v60 = vadd.f32 %v393_v58, %v265_v59 }
 0x164   :  { %276 = vadd.xlane.f32.xlu0 %v271_v60 }
 0x16a   :  { %v251_v26 = vpop.f32.mrf.mxu3 }
 0x16b   :  { %v266_v61 = vadd.f32 %v251_v26, %v572_v17 }
 0x16d   :  { %v272_v62 = vadd.f32 %v393_v58, %v266_v61 }
 0x16f   :  { %278 = vadd.xlane.f32.xlu0 %v272_v62 }
 0x1d7   :  { %v277_v35 = vpop.xlane.xlu0 %276 }
 0x1d8   :  { %v280_v1 = vmul.f32 0.03125, %v277_v35 }
 0x1da   :  { %v282_v2 = vsub.f32 %v271_v60, %v280_v1 }
 0x1dc   :  { %v284_v3 = vsel %vm275_vm8, %v282_v2, 0.0 }
 0x1dd   :  { %v286_v4 = vmul.f32 %v284_v3, %v284_v3 }
 0x1df   :  { %288 = vadd.xlane.f32.xlu1 %v286_v4 }
 0x1e2   :  { %v279_v5 = vpop.xlane.xlu0 %278 }
 0x1e3   :  { %v281_v6 = vmul.f32 0.03125, %v279_v5 }
 0x1e5   :  { %v283_v7 = vsub.f32 %v272_v62, %v281_v6 }
 0x1e7   :  { %v285_v16 = vsel %vm275_vm8, %v283_v7, 0.0 }
 0x1e8   :  { %v287_v8 = vmul.f32 %v285_v16, %v285_v16 }
 0x1ea   :  { %290 = vadd.xlane.f32.xlu1 %v287_v8 }
 0x252   :  { %v289_v9 = vpop.xlane.xlu1 %288 }
 0x253   :  { %v292_v10 = vmul.f32 0.03125, %v289_v9 }
 0x255   :  { %v294_v17 = vadd.f32 1e-05, %v292_v10 }
 0x257   :  { %400 = vrsqrt.f32 %v294_v17  ;;  %vm302_vm10 = vweird.f32 %v294_v17 }
 0x25d   :  { %v401_v11 = vpop.eup %400  ;;  %v291_v12 = vpop.xlane.xlu1 %290 }
 0x25e   :  { %v297_v13 = vmul.f32 %v401_v11, %v294_v17  ;;  %v293_v14 = vmul.f32 0.03125, %v291_v12  ;;  %vm303_vm9 = vweird.f32 %v401_v11 }
 0x25f   :  { %vm304_vm11 = vmor %vm302_vm10, %vm303_vm9 }
 0x260   :  { %v298_v15 = vmul.f32 %v401_v11, %v297_v13  ;;  %v295_v18 = vadd.f32 1e-05, %v293_v14 }
 0x262   :  { %v299_v19 = vmul.f32 0.5, %v298_v15  ;;  %402 = vrsqrt.f32 %v295_v18  ;;  %vm312_vm13 = vweird.f32 %v295_v18 }
 0x264   :  { %v300_v20 = vsub.f32 1.5, %v299_v19 }
 0x266   :  { %v301_v21 = vmul.f32 %v401_v11, %v300_v20 }
 0x268   :  { %v403_v23 = vpop.eup %402  ;;  %v305_v24 = vsel %vm304_vm11, %v401_v11, %v301_v21 }
 0x269   :  { %v316_v25 = vmul.f32 %v305_v24, %v284_v3  ;;  %v307_v27 = vmul.f32 %v403_v23, %v295_v18  ;;  %vm313_vm12 = vweird.f32 %v403_v23 }
 0x26a   :  { %vm314_vm14 = vmor %vm312_vm13, %vm313_vm12 }
 0x26b   :  { %v308_v30 = vmul.f32 %v403_v23, %v307_v27  ;;  %v322_v31 = vmul.f32 %v394_v22, %v316_v25 }
 0x26d   :  { %v309_v32 = vmul.f32 0.5, %v308_v30  ;;  %v328_v33 = vadd.f32 %v395_v29, %v322_v31 }
 0x26f   :  { %v310_v36 = vsub.f32 1.5, %v309_v32  ;;  %330 = vst [vmem:[#allocation9] sm:$0xff] %v328_v33 }
 0x271   :  { %v311_v37 = vmul.f32 %v403_v23, %v310_v36 }
 0x273   :  { %v315_v39 = vsel %vm314_vm14, %v403_v23, %v311_v37 }
 0x274   :  { %v317_v34 = vmul.f32 %v315_v39, %v285_v16 }
 0x276   :  { %v323_v40 = vmul.f32 %v394_v22, %v317_v34 }
 0x278   :  { %v329_v41 = vadd.f32 %v395_v29, %v323_v40 }
 0x27a   :  { %331 = vst [vmem:[#allocation9 + $0x8] sm:$0xff] %v329_v41 }
 0x27b   :  { %344 = dma.vmem_to_hbm [thread:$0]  %s337_s21, 256, %s339_s24, [#allocation5], %s507_s9, %s507_s9, %s508_s10  }
 0x27c   :  { %504 = dma.done.wait [#allocation5], 256  }
 0x27d   :  { %505 = vsyncadd [#allocation5], 4294967040 }
 0x27e   :  { %349 = vsyncpa [#allocation4], 1 }
 0x27f   :  { %350 = vsyncpa [#allocation7], 1 }
 0x280   :  { %351 = vsyncpa [#allocation5], 1 }

</bundles_post_ra>
